<compile_context>
chip_gen: v7x
topology: tpu7x:2x2x1
jax: 0.10.0
libtpu: 0.0.40
codegen_flags: <defaults>
</compile_context>

<pallas_src>
import jax
import jax.numpy as jnp
from jax import lax
from jax.experimental import pallas as pl
from jax.experimental.pallas import tpu as pltpu


NEG_INF = -1e30  # -inf surrogate: exp() underflows to exactly 0, avoids NaNs


def _seq_attn_kernel(x_ref, y_ref, mask_ref, w_ref, b_ref, o_ref, yproj_ref):
    """One (batch, len1-tile) grid step.

    x_ref:     (TL1, H)    query rows for this tile
    y_ref:     (L2p, H)    full (padded) key/value sequence for this batch elem
    mask_ref:  (1,   L2p)  additive mask: 0.0 valid, NEG_INF for pad/masked
    w_ref:     (H,   H)    shared nn.Linear weight, original (out, in) layout
    b_ref:     (1,   H)    shared nn.Linear bias
    o_ref:     (TL1, H)    matched sequence output
    yproj_ref: (L2p, H)    bf16 VMEM cache of relu(linear(y)); carried across
                           the inner ("arbitrary") len1-tile axis
    """
    w_bf16 = w_ref[...].astype(jnp.bfloat16)
    bias = b_ref[...]

    # Compute the shared y projection only once per batch element (first len1
    # tile); subsequent len1 tiles of the same batch reuse the VMEM cache.
    @pl.when(pl.program_id(1) == 0)
    def _():
        yp = lax.dot_general(
            y_ref[...].astype(jnp.bfloat16), w_bf16,
            dimension_numbers=(((1,), (1,)), ((), ())),   # y @ W^T
            preferred_element_type=jnp.float32) + bias
        yproj_ref[...] = jnp.maximum(yp, 0.0).astype(jnp.bfloat16)

    # x projection + ReLU for this row tile (bf16 MXU, f32 accumulation).
    xp = lax.dot_general(
        x_ref[...].astype(jnp.bfloat16), w_bf16,
        dimension_numbers=(((1,), (1,)), ((), ())),       # x @ W^T
        preferred_element_type=jnp.float32) + bias
    x_proj = jnp.maximum(xp, 0.0).astype(jnp.bfloat16)

    # scores[i, j] = <x_proj_i, y_proj_j>  -> (TL1, L2p), f32 accumulation.
    scores = lax.dot_general(
        x_proj, yproj_ref[...],
        dimension_numbers=(((1,), (1,)), ((), ())),
        preferred_element_type=jnp.float32)

    # Additive -inf mask, then numerically-stable softmax numerator (f32).
    scores = scores + mask_ref[...]
    m = jnp.max(scores, axis=-1, keepdims=True)
    p = jnp.exp(scores - m)
    denom = jnp.sum(p, axis=-1, keepdims=True)

    # Unnormalized attention over the ORIGINAL (un-projected) y, then fold the
    # softmax denominator into the small (TL1, H) output via EUP reciprocal
    # instead of dividing the much larger (TL1, L2p) probability matrix.
    unnorm = jnp.dot(p.astype(jnp.bfloat16), y_ref[...].astype(jnp.bfloat16),
                     preferred_element_type=jnp.float32)
    o_ref[...] = (unnorm * pl.reciprocal(denom, approx=True)).astype(o_ref.dtype)


def _vmem_bytes_estimate(tl1, len2_p, hdim):
    """Rough per-core VMEM working set for one (batch, len1-tile) step."""
    f32 = 4
    blocks = 2 * f32 * (tl1 * hdim          # x tile (double-buffered)
                        + len2_p * hdim     # y block
                        + len2_p            # additive mask
                        + hdim * hdim       # weight
                        + hdim              # bias
                        + tl1 * hdim)       # out tile
    scratch = 2 * len2_p * hdim             # bf16 y_proj cache
    live = f32 * (3 * tl1 * len2_p          # scores / p intermediates
                  + 4 * tl1 * hdim)         # projections / unnorm
    return blocks + scratch + live


def _pick_len1_tile(len1, len2_p, hdim, budget=24 << 20):
    """Largest sublane-friendly row tile that divides len1 and keeps the
    working set inside a conservative VMEM budget (safe on v7x/v5e)."""
    candidates = [t for t in (512, 256, 128, 64, 32, 16, 8) if len1 % t == 0]
    if not candidates:
        return len1                          # full-dim block is always legal
    for t in candidates:
        if _vmem_bytes_estimate(t, len2_p, hdim) <= budget:
            return t
    return candidates[-1]


def seq_attn_match(x, y, y_mask, weight, bias):
    """SeqAttnMatch forward.

    x:      (B, L1, H)   y: (B, L2, H)
    y_mask: (B, L2)      1 for padding, 0 for true tokens
    weight: (H, H)       nn.Linear weight (out, in) -- used as-is, no transpose
    bias:   (H,)
    returns (B, L1, H)
    """
    bsz, len1, hdim = x.shape
    _, len2, _ = y.shape

    # Pad L2 up to a lane multiple: lane-dense scores tile / softmax reductions
    # / AV K-dim. Padded y rows are zero and their mask column is -inf.
    len2_p = max(128, ((len2 + 127) // 128) * 128)
    if len2_p != len2:
        y = jnp.pad(y, ((0, 0), (0, len2_p - len2), (0, 0)))

    # Additive mask: 0 for valid tokens, NEG_INF for masked or padded columns.
    valid = (y_mask == 0)
    valid = jnp.pad(valid, ((0, 0), (0, len2_p - len2)), constant_values=False)
    mask_add = jnp.where(valid, 0.0, NEG_INF).astype(jnp.float32)
    mask_add = mask_add.reshape(bsz, 1, len2_p)

    tl1 = _pick_len1_tile(len1, len2_p, hdim)
    grid = (bsz, len1 // tl1)

    b2 = bias.reshape(1, hdim).astype(jnp.float32)

    vmem_limit = int(min(max(2 * _vmem_bytes_estimate(tl1, len2_p, hdim),
                             16 << 20), 48 << 20))

    return pl.pallas_call(
        _seq_attn_kernel,
        out_shape=jax.ShapeDtypeStruct((bsz, len1, hdim), x.dtype),
        grid=grid,
        in_specs=[
            # x: per (batch, len1-tile) block; batch dim squeezed out
            pl.BlockSpec((None, tl1, hdim), lambda bi, i: (bi, i, 0)),
            # y: full padded sequence per batch element (constant over len1)
            pl.BlockSpec((None, len2_p, hdim), lambda bi, i: (bi, 0, 0)),
            # additive mask (B, 1, L2p)
            pl.BlockSpec((None, 1, len2_p), lambda bi, i: (bi, 0, 0)),
            # shared linear weight (out, in) and bias: constant blocks
            pl.BlockSpec((hdim, hdim), lambda bi, i: (0, 0)),
            pl.BlockSpec((1, hdim), lambda bi, i: (0, 0)),
        ],
        out_specs=pl.BlockSpec((None, tl1, hdim), lambda bi, i: (bi, i, 0)),
        scratch_shapes=[pltpu.VMEM((len2_p, hdim), jnp.bfloat16)],
        compiler_params=pltpu.CompilerParams(
            # batch stays "parallel" (v7x megacore sharding); len1 must be
            # "arbitrary" because the y_proj cache is carried across its tiles.
            dimension_semantics=("parallel", "arbitrary"),
            vmem_limit_bytes=vmem_limit,
        ),
    )(x, y, mask_add, weight, b2)


if __name__ == "__main__":
    # Small, tile-friendly shapes: hidden = 128 (lane dim), sublane dims % 8.
    bsz, len1, len2, hdim = 2, 16, 24, 128

    key = jax.random.PRNGKey(0)
    kx, ky, kw, kb = jax.random.split(key, 4)

    x = jax.random.normal(kx, (bsz, len1, hdim), dtype=jnp.float32)
    y = jax.random.normal(ky, (bsz, len2, hdim), dtype=jnp.float32)

    # y_mask: 1 for padding, 0 for true tokens (pad the tail of each sequence)
    valid_lens = jnp.array([20, 17], dtype=jnp.int32)
    y_mask = (jnp.arange(len2)[None, :] >= valid_lens[:, None]).astype(jnp.int32)

    # nn.Linear(input_size, input_size) parameters (weight is (out, in)).
    scale = 0.3 / jnp.sqrt(jnp.float32(hdim))
    weight = scale * jax.random.normal(kw, (hdim, hdim), dtype=jnp.float32)
    bias = 0.1 * jax.random.normal(kb, (hdim,), dtype=jnp.float32)

    out = seq_attn_match(x, y, y_mask, weight, bias)
    out = jax.block_until_ready(out)

    # Pure-JAX f32 reference (same math as the PyTorch module).
    x_proj = jax.nn.relu(x @ weight.T + bias)
    y_proj = jax.nn.relu(y @ weight.T + bias)
    scores = jnp.einsum('bld,bmd->blm', x_proj, y_proj)
    scores = jnp.where(y_mask[:, None, :] > 0, NEG_INF, scores)
    alpha = jax.nn.softmax(scores, axis=-1)
    ref = jnp.einsum('blm,bmd->bld', alpha, y)

    assert out.shape == (bsz, len1, hdim)
    max_err = jnp.max(jnp.abs(out - ref))
    assert jnp.allclose(out, ref, atol=5e-2, rtol=5e-2), f"max abs err {max_err}"

    print("KERNEL_OK")
</pallas_src>

<mosaic_0001>
module attributes {stable_mosaic.version = 11 : i64} {
  func.func @_seq_attn_kernel(%arg0: i32, %arg1: i32, %arg2: memref<1x16x128xf32, #tpu.memory_space<vmem>>, %arg3: memref<1x128x128xf32, #tpu.memory_space<vmem>>, %arg4: memref<1x1x128xf32, #tpu.memory_space<vmem>>, %arg5: memref<128x128xf32, #tpu.memory_space<vmem>>, %arg6: memref<1x128xf32, #tpu.memory_space<vmem>>, %arg7: memref<1x16x128xf32, #tpu.memory_space<vmem>>, %arg8: memref<128x128xbf16, #tpu.memory_space<vmem>>) attributes {dimension_semantics = [#tpu.dimension_semantics<parallel>, #tpu.dimension_semantics<arbitrary>], iteration_bounds = array<i64: 2, 1>, scalar_prefetch = 0 : i64, scratch_operands = 1 : i64, tpu.core_type = #tpu.core_type<tc>, window_params = [{transform_indices = @transform_0, window_bounds = array<i64: 1, 16, 128>}, {transform_indices = @transform_1, window_bounds = array<i64: 1, 128, 128>}, {transform_indices = @transform_2, window_bounds = array<i64: 1, 1, 128>}, {pipeline_mode = #tpu.pipeline_mode<synchronous>, transform_indices = @transform_3, window_bounds = array<i64: 128, 128>}, {pipeline_mode = #tpu.pipeline_mode<synchronous>, transform_indices = @transform_4, window_bounds = array<i64: 1, 128>}, {transform_indices = @transform_5, window_bounds = array<i64: 1, 16, 128>}]} {
    %c0 = arith.constant 0 : index
    %c0_0 = arith.constant 0 : index
    %0 = vector.load %arg5[%c0, %c0_0] : memref<128x128xf32, #tpu.memory_space<vmem>>, vector<128x128xf32>
    %1 = arith.truncf %0 : vector<128x128xf32> to vector<128x128xbf16>
    %c0_1 = arith.constant 0 : index
    %c0_2 = arith.constant 0 : index
    %2 = vector.load %arg6[%c0_1, %c0_2] : memref<1x128xf32, #tpu.memory_space<vmem>>, vector<1x128xf32>
    %c0_i32 = arith.constant 0 : i32
    %3 = arith.cmpi eq, %arg1, %c0_i32 : i32
    %4 = arith.extui %3 : i1 to i32
    %c0_i32_3 = arith.constant 0 : i32
    %5 = arith.cmpi ne, %4, %c0_i32_3 : i32
    scf.if %5 {
      %c0_23 = arith.constant 0 : index
      %c0_24 = arith.constant 0 : index
      %c0_25 = arith.constant 0 : index
      %39 = vector.load %arg3[%c0_23, %c0_24, %c0_25] : memref<1x128x128xf32, #tpu.memory_space<vmem>>, vector<1x128x128xf32>
      %40 = vector.shape_cast %39 : vector<1x128x128xf32> to vector<128x128xf32>
      %41 = arith.truncf %40 : vector<128x128xf32> to vector<128x128xbf16>
      %cst_26 = arith.constant dense<0.000000e+00> : vector<128x128xf32>
      %42 = tpu.matmul %41, %1, %cst_26 {dimension_numbers = #tpu.dot_dimension_numbers<[1], [1], [0], [0], [0, 0, 1, 0], [], []>} : vector<128x128xbf16>, vector<128x128xbf16>, vector<128x128xf32> -> vector<128x128xf32>
      %43 = vector.broadcast %2 : vector<1x128xf32> to vector<128x128xf32>
      %44 = arith.addf %42, %43 : vector<128x128xf32>
      %cst_27 = arith.constant 0.000000e+00 : f32
      %45 = vector.broadcast %cst_27 : f32 to vector<128x128xf32>
      %46 = arith.maximumf %44, %45 : vector<128x128xf32>
      %47 = arith.truncf %46 : vector<128x128xf32> to vector<128x128xbf16>
      %c0_28 = arith.constant 0 : index
      %c0_29 = arith.constant 0 : index
      %48 = vector.load %arg8[%c0_28, %c0_29] : memref<128x128xbf16, #tpu.memory_space<vmem>>, vector<128x128xbf16>
      tpu.vector_store %arg8[%c0_28, %c0_29], %47 {strides = array<i32>} : memref<128x128xbf16, #tpu.memory_space<vmem>>, vector<128x128xbf16>,
    } else {
    }
    %c0_4 = arith.constant 0 : index
    %c0_5 = arith.constant 0 : index
    %c0_6 = arith.constant 0 : index
    %6 = vector.load %arg2[%c0_4, %c0_5, %c0_6] : memref<1x16x128xf32, #tpu.memory_space<vmem>>, vector<1x16x128xf32>
    %7 = vector.shape_cast %6 : vector<1x16x128xf32> to vector<16x128xf32>
    %8 = arith.truncf %7 : vector<16x128xf32> to vector<16x128xbf16>
    %cst = arith.constant dense<0.000000e+00> : vector<16x128xf32>
    %9 = tpu.matmul %8, %1, %cst {dimension_numbers = #tpu.dot_dimension_numbers<[1], [1], [0], [0], [0, 0, 1, 0], [], []>} : vector<16x128xbf16>, vector<128x128xbf16>, vector<16x128xf32> -> vector<16x128xf32>
    %10 = vector.broadcast %2 : vector<1x128xf32> to vector<16x128xf32>
    %11 = arith.addf %9, %10 : vector<16x128xf32>
    %cst_7 = arith.constant 0.000000e+00 : f32
    %12 = vector.broadcast %cst_7 : f32 to vector<16x128xf32>
    %13 = arith.maximumf %11, %12 : vector<16x128xf32>
    %14 = arith.truncf %13 : vector<16x128xf32> to vector<16x128xbf16>
    %c0_8 = arith.constant 0 : index
    %c0_9 = arith.constant 0 : index
    %15 = vector.load %arg8[%c0_8, %c0_9] : memref<128x128xbf16, #tpu.memory_space<vmem>>, vector<128x128xbf16>
    %cst_10 = arith.constant dense<0.000000e+00> : vector<16x128xf32>
    %16 = tpu.matmul %14, %15, %cst_10 {dimension_numbers = #tpu.dot_dimension_numbers<[1], [1], [0], [0], [0, 0, 1, 0], [], []>} : vector<16x128xbf16>, vector<128x128xbf16>, vector<16x128xf32> -> vector<16x128xf32>
    %c0_11 = arith.constant 0 : index
    %c0_12 = arith.constant 0 : index
    %c0_13 = arith.constant 0 : index
    %17 = vector.load %arg4[%c0_11, %c0_12, %c0_13] : memref<1x1x128xf32, #tpu.memory_space<vmem>>, vector<1x1x128xf32>
    %18 = vector.shape_cast %17 : vector<1x1x128xf32> to vector<1x128xf32>
    %19 = vector.broadcast %18 : vector<1x128xf32> to vector<16x128xf32>
    %20 = arith.addf %16, %19 : vector<16x128xf32>
    %cst_14 = arith.constant dense<0xFF800000> : vector<16xf32>
    %21 = vector.multi_reduction <maximumf>, %20, %cst_14 [1] : vector<16x128xf32> to vector<16xf32>
    %22 = vector.shape_cast %21 : vector<16xf32> to vector<16x1xf32>
    %23 = vector.broadcast %22 : vector<16x1xf32> to vector<16x128xf32>
    %24 = arith.subf %20, %23 : vector<16x128xf32>
    %25 = math.exp %24 : vector<16x128xf32>
    %cst_15 = arith.constant dense<0.000000e+00> : vector<16xf32>
    %26 = vector.multi_reduction <add>, %25, %cst_15 [1] : vector<16x128xf32> to vector<16xf32>
    %27 = vector.shape_cast %26 : vector<16xf32> to vector<16x1xf32>
    %28 = arith.truncf %25 : vector<16x128xf32> to vector<16x128xbf16>
    %c0_16 = arith.constant 0 : index
    %c0_17 = arith.constant 0 : index
    %c0_18 = arith.constant 0 : index
    %29 = vector.load %arg3[%c0_16, %c0_17, %c0_18] : memref<1x128x128xf32, #tpu.memory_space<vmem>>, vector<1x128x128xf32>
    %30 = vector.shape_cast %29 : vector<1x128x128xf32> to vector<128x128xf32>
    %31 = arith.truncf %30 : vector<128x128xf32> to vector<128x128xbf16>
    %cst_19 = arith.constant dense<0.000000e+00> : vector<16x128xf32>
    %32 = tpu.matmul %28, %31, %cst_19 {dimension_numbers = #tpu.dot_dimension_numbers<[1], [0], [0], [1], [0, 0, 1, 1], [], []>} : vector<16x128xbf16>, vector<128x128xbf16>, vector<16x128xf32> -> vector<16x128xf32>
    %33 = tpu.reciprocal %27 {approx = true} : vector<16x1xf32> -> vector<16x1xf32>
    %34 = vector.broadcast %33 : vector<16x1xf32> to vector<16x128xf32>
    %35 = arith.mulf %32, %34 : vector<16x128xf32>
    %c0_20 = arith.constant 0 : index
    %c0_21 = arith.constant 0 : index
    %c0_22 = arith.constant 0 : index
    %36 = vector.load %arg7[%c0_20, %c0_21, %c0_22] : memref<1x16x128xf32, #tpu.memory_space<vmem>>, vector<1x16x128xf32>
    %37 = vector.shape_cast %36 : vector<1x16x128xf32> to vector<16x128xf32>
    %38 = vector.shape_cast %35 : vector<16x128xf32> to vector<1x16x128xf32>
    tpu.vector_store %arg7[%c0_20, %c0_21, %c0_22], %38 {strides = array<i32>} : memref<1x16x128xf32, #tpu.memory_space<vmem>>, vector<1x16x128xf32>,
    return
  }
  func.func @transform_0(%arg0: i32, %arg1: i32) -> (i32, i32, i32) {
    %c0_i32 = arith.constant 0 : i32
    %c0_i32_0 = arith.constant 0 : i32
    return %arg0, %arg1, %c0_i32 : i32, i32, i32
  }
  func.func @transform_1(%arg0: i32, %arg1: i32) -> (i32, i32, i32) {
    %c0_i32 = arith.constant 0 : i32
    %c0_i32_0 = arith.constant 0 : i32
    %c0_i32_1 = arith.constant 0 : i32
    return %arg0, %c0_i32, %c0_i32_0 : i32, i32, i32
  }
  func.func @transform_2(%arg0: i32, %arg1: i32) -> (i32, i32, i32) {
    %c0_i32 = arith.constant 0 : i32
    %c0_i32_0 = arith.constant 0 : i32
    %c0_i32_1 = arith.constant 0 : i32
    return %arg0, %c0_i32, %c0_i32_0 : i32, i32, i32
  }
  func.func @transform_3(%arg0: i32, %arg1: i32) -> (i32, i32) {
    %c0_i32 = arith.constant 0 : i32
    %c0_i32_0 = arith.constant 0 : i32
    %c0_i32_1 = arith.constant 0 : i32
    return %c0_i32, %c0_i32_0 : i32, i32
  }
  func.func @transform_4(%arg0: i32, %arg1: i32) -> (i32, i32) {
    %c0_i32 = arith.constant 0 : i32
    %c0_i32_0 = arith.constant 0 : i32
    %c0_i32_1 = arith.constant 0 : i32
    return %c0_i32, %c0_i32_0 : i32, i32
  }
  func.func @transform_5(%arg0: i32, %arg1: i32) -> (i32, i32, i32) {
    %c0_i32 = arith.constant 0 : i32
    %c0_i32_0 = arith.constant 0 : i32
    return %arg0, %arg1, %c0_i32 : i32, i32, i32
  }
}

</mosaic_0001>

<bundles_post_ra>
// kernel: tpu_custom_call.1
= control target key start
LH: loop header
LB: loop body
LE: loop exit
PB: predicated region body
PF: predicated region fallthrough
CT: control target
= control target key end

     0   :  { %s1689_s0 = inlined_call_operand.hbm [shape: f32[2,16,128], index: 0, kind: input, shape index: {}]   ;;  %s1690_s1 = inlined_call_operand.hbm [shape: f32[2,128,128], index: 1, kind: input, shape index: {}]   ;;  %s1691_s2 = inlined_call_operand.vmem [shape: f32[2,1,128], index: 2, kind: input, shape index: {}]   ;;  %s1692_s3 = inlined_call_operand.hbm [shape: f32[128,128], index: 3, kind: input, shape index: {}]   ;;  %s1693_s4 = inlined_call_operand.vmem [shape: f32[1,128], index: 4, kind: input, shape index: {}]   ;;  %s1694_s5 = inlined_call_operand.hbm [shape: f32[2,16,128], index: 5, kind: output, shape index: {}]  }
   0x1   :  { %1704 = sst [smem:[#allocation17_spill]] %s1689_s0 }
   0x2   :  { %1705 = sst [smem:[#allocation18_spill]] %s1692_s3 }
   0x3   :  { %10 = vsyncpa [#allocation4], 0 }
   0x4   :  { %12 = vsyncpa [#allocation4 + $0x1], 0 }
   0x5   :  { %13 = vsyncpa [#allocation7], 0 }
   0x6   :  { %15 = vsyncpa [#allocation7 + $0x1], 0 }
   0x7   :  { %16 = vsyncpa [#allocation5], 0 }
   0x8   :  { %18 = vsyncpa [#allocation5 + $0x1], 0  ;;  %s1332_s18 = smov 0   ;;  %s1334_s19 = smov 0  }
   0x9   :  { %s1336_s20 = smov 0   ;;  %s1338_s21 = smov 0  }
   0xa   :  { %s1340_s22 = smov 0   ;;  %s1342_s23 = smov 0  }
   0xb LB: > { %1706 = sst [smem:[#allocation14_spill]] %s1278_s20  ;;  %s1363_s24 = sadd.s32 4294967295, %s1290_s23   ;;  %s1290_s23 = sphi %s1342_s23, %s24_s23   ;;  %s1286_s22 = sphi %s1340_s22, %s1734_s22   ;;  %s1282_s21 = sphi %s1338_s21, %s1733_s21   ;;  %s1278_s20 = sphi %s1336_s20, %s1729_s20   ;;  %s1274_s19 = sphi %s1334_s19, %s1732_s19   ;;  %s1270_s18 = sphi %s1332_s18, %s1731_s18  }
   0xc   : > { %s860_s25 = sadd.s32 4294967294, %s1290_s23   ;;  %p58_p0 = scmp.ne.s32.totalorder %s1274_s19, %s1270_s18 }
   0xd   : > { %p1695_p1 = scmp.eq.s32.totalorder %s1363_s24, 0  ;;  %p184_p3 = scmp.eq.s32.totalorder %s860_s25, 1 }
   0xe   : > { %p861_p5 = scmp.ge.s32.totalorder %s1290_s23, 1  ;;  %p191_p7 = scmp.lt.s32.totalorder %s1290_s23, 3 }
   0xf   : > { %p1372_p4 = por %p1695_p1, %p58_p0  ;;  %p1377_p6 = por %p184_p3, %p58_p0 }
  0x10   : > { %p1382_p8 = pnand %p861_p5, %p191_p7  ;;  %s1292_s29 = smov [#allocation8]  }
  0x11   : > { %s1707_s26 = scalar_select %p1372_p4, 1, 0 }
  0x12   : > { %s1708_s27 = scalar_select %p1377_p6, 1, 0 }
  0x13   : > { %s1709_s28 = scalar_select %p1382_p8, 1, 0 }
  0x14   : > { %s203_s30 = sshll.u32 %s1292_s29, 4  ;;  %p1030_p9 = pneg %p1382_p8  ;;  %s204_s30 = int_to_ptr.vmem [resolvable:$true] %s203_s30 }
  0x15   : > { %s36_s7 = sadd.s32 1, %s1286_s22  ;;  %s1711_s3 = sld [smem:[#allocation18_spill]] }
  0x16   : > { %p1391_p11 = pnand %p1030_p9, %p1695_p1 }
  0x18   : > { %p1114_p13 = pneg %p1391_p11 }
  0x1b   : > { %s1112_s10 = scalar_lea.hbm %s1711_s3, 2048 }
  0x1c   : > { %p1113_p12 = scmp.ne.s32.totalorder %s1711_s3, %s1112_s10  ;;  %p1119_p5 = scmp.lt.u32.totalorder %s1112_s10, %s1711_s3 }
  0x1e   : > { %p1115_p0 = pnand %p1114_p13, %p1113_p12 }
  0x20   : > { %p1116_p3 = pneg %p1115_p0 }
  0x22   : > { %p1121_p7 = pnand %p1119_p5, %p1116_p3 }
  0x24   : > { %1124 = shalt.err (!%p1121_p7)
}
  0x25   : > { %s1125_s15 = scalar_lea.vmem %s204_s30, 2048  ;;  %p1133_p2 = scmp.lt.s32.totalorder %s204_s30, %s204_s30 }
  0x26   : > { %p1126_p9 = scmp.ne.s32.totalorder %s204_s30, %s1125_s15  ;;  %p1134_p6 = scmp.lt.s32.totalorder %s1125_s15, %s1125_s15 }
  0x28   : > { %p1128_p10 = pnand %p1126_p9, %p1114_p13  ;;  %p1135_p4 = por %p1134_p6, %p1133_p2 }
  0x2a   : > { %p1129_p1 = pneg %p1128_p10 }
  0x2c   : > { %p1136_p8 = pnand %p1135_p4, %p1129_p1 }
  0x2e   : > { %1139 = shalt.err (!%p1136_p8)
}
  0x2f   : > { %s1698_s16 = smov 128   ;;  %s1700_s17 = smov 8  }
  0x30   : > { %1033 = dma.hbm_to_vmem [thread:$0]  (!%p1391_p11), %s1711_s3, 2048, %s204_s30, [#allocation7], %s1698_s16, %s1698_s16, %s1700_s17  }
  0x31   : > { %p38_p1 = scmp.ge.s32.totalorder %s36_s7, 2  ;;  %s45_s8 = sadd.s32 1, %s1278_s20 }
  0x32   : > { %p52_p2 = scmp.ne.s32.totalorder %s1278_s20, %s1274_s19  ;;  %p53_p4 = scmp.eq.s32.totalorder %s1290_s23, 0 }
  0x33   : > { %s1736_s7 = smov (%p38_p1, %s36_s7), 0  ;;  %p1714_p8 = scmp.eq.s32.totalorder %s1363_s24, 1 }
  0x34   : > { %1712 = sst [smem:[#allocation15_spill]] %s1736_s7  ;;  %p1421_p6 = por %p53_p4, %p52_p2 }
  0x35   : > { %p1427_p10 = por %p1714_p8, %p52_p2  ;;  %s40_s10 = ssub.s32 %s1286_s22, %s1736_s7 }
  0x36   : > { %p1046_p11 = scmp.lt.s32.totalorder %s1290_s23, 2  ;;  %p43_p12 = scmp.eq.s32.totalorder %s40_s10, 0 }
  0x37   : > { %s1435_s30 = sand.u32 1, %s1278_s20   ;;  %s881_s13 = sshll.u32 %s1286_s22, 8 }
  0x38   : > { %s864_s11 = sshll.u32 %s1435_s30, 4  ;;  %s1717_s0 = sld [smem:[#allocation17_spill]] }
  0x39   : > { %s1439_s12 = scalar_select %p43_p12, %s1278_s20, %s45_s8  }
  0x3a   : > { %s224_s29 = scalar_lea.vmem [#allocation3], %s864_s11  ;;  %p1451_p13 = pnand %p1046_p11, %p1421_p6 }
  0x3b   : > { %1716 = sst [smem:[#allocation16_spill]] %s1439_s12  ;;  %s233_s10 = sshll.u32 %s224_s29, 4  ;;  %s1447_s10 = int_to_ptr.vmem [resolvable:$true] %s233_s10 }
  0x3c   : > { %s867_s17 = sshll.u32 %s1435_s30, 7  ;;  %s221_s14 = scalar_lea.sflag [#allocation4], %s1435_s30 }
  0x3d   : > { %p1142_p3 = pneg %p1451_p13 }
  0x3e   : > { %s1445_s25 = scalar_lea.hbm %s1717_s0, %s881_s13  ;;  %s1145_s9 = scalar_lea.hbm %s1717_s0, 512 }
  0x3f   : > { %s1140_s13 = scalar_lea.hbm %s1445_s25, 256  ;;  %p1146_p9 = scmp.lt.u32.totalorder %s1445_s25, %s1717_s0 }
  0x40   : > { %p1141_p0 = scmp.ne.s32.totalorder %s1445_s25, %s1140_s13  ;;  %p1147_p1 = scmp.lt.u32.totalorder %s1145_s9, %s1140_s13 }
  0x41   : > { %p1149_p4 = scmp.lt.u32.totalorder %s1140_s13, %s1445_s25 }
  0x42   : > { %p1143_p5 = pnand %p1142_p3, %p1141_p0  ;;  %p1148_p2 = por %p1147_p1, %p1146_p9 }
  0x44   : > { %p1144_p7 = pneg %p1143_p5  ;;  %p1150_p6 = por %p1149_p4, %p1148_p2 }
  0x46   : > { %p1151_p8 = pnand %p1150_p6, %p1144_p7 }
  0x48   : > { %1154 = shalt.err (!%p1151_p8)
}
  0x49   : > { %s1155_s8 = scalar_lea.vmem %s1447_s10, 256  ;;  %s1295_s11 = smov [#allocation3]  }
  0x4a   : > { %p1156_p11 = scmp.ne.s32.totalorder %s1447_s10, %s1155_s8  ;;  %s1160_s15 = sshll.u32 %s1295_s11, 4  ;;  %s1161_s15 = int_to_ptr.vmem [resolvable:$false] %s1160_s15 }
  0x4b   : > { %s1162_s3 = scalar_lea.vmem %s1161_s15, 512  ;;  %p1163_p5 = scmp.lt.s32.totalorder %s1447_s10, %s1161_s15 }
  0x4c   : > { %p1158_p12 = pnand %p1156_p11, %p1142_p3  ;;  %p1164_p9 = scmp.lt.s32.totalorder %s1162_s3, %s1155_s8 }
  0x4e   : > { %p1159_p0 = pneg %p1158_p12  ;;  %p1165_p1 = por %p1164_p9, %p1163_p5 }
  0x50   : > { %p1166_p2 = pnand %p1165_p1, %p1159_p0 }
  0x52   : > { %1169 = shalt.err (!%p1166_p2)
}
  0x53   : > { %s1719_s13 = smov 8   ;;  %s1720_s9 = smov 128  }
  0x54   : > { %1037 = dma.hbm_to_vmem [thread:$0]  (!%p1451_p13), %s1445_s25, 256, %s1447_s10, %s221_s14, %s1720_s9, %s1720_s9, %s1719_s13  }
  0x55   : > { %s882_s29 = sshll.u32 %s1286_s22, 11  ;;  %s247_s3 = scalar_lea.vmem [#allocation6], %s867_s17 }
  0x56   : > { %s1492_s15 = scalar_lea.hbm %s1690_s1, %s882_s29  ;;  %s254_s0 = sshll.u32 %s247_s3, 4  ;;  %s1496_s0 = int_to_ptr.vmem [resolvable:$true] %s254_s0 }
  0x57   : > { %s1721_s7 = sand.u32 1, %s1290_s23   ;;  %s1170_s20 = scalar_lea.hbm %s1492_s15, 2048 }
  0x58   : > { %s1500_s12 = scalar_lea.sflag [#allocation7], %s1721_s7  ;;  %p1171_p7 = scmp.ne.s32.totalorder %s1492_s15, %s1170_s20 }
  0x59   : > { %s1175_s30 = scalar_lea.hbm %s1690_s1, 4096  ;;  %p1176_p8 = scmp.lt.u32.totalorder %s1492_s15, %s1690_s1 }
  0x5a   : > { %p1173_p4 = pnand %p1171_p7, %p1142_p3  ;;  %p1177_p11 = scmp.lt.u32.totalorder %s1175_s30, %s1170_s20 }
  0x5b   : > { %p1179_p0 = scmp.lt.u32.totalorder %s1170_s20, %s1492_s15 }
  0x5c   : > { %p1174_p6 = pneg %p1173_p4  ;;  %p1178_p12 = por %p1177_p11, %p1176_p8 }
  0x5e   : > { %p1180_p5 = por %p1179_p0, %p1178_p12 }
  0x60   : > { %p1181_p9 = pnand %p1180_p5, %p1174_p6 }
  0x62   : > { %1184 = shalt.err (!%p1181_p9)
}
  0x63   : > { %s1185_s7 = scalar_lea.vmem %s1496_s0, 2048  ;;  %s1296_s17 = smov [#allocation6]  }
  0x64   : > { %p1186_p1 = scmp.ne.s32.totalorder %s1496_s0, %s1185_s7  ;;  %s1190_s11 = sshll.u32 %s1296_s17, 4  ;;  %s1191_s11 = int_to_ptr.vmem [resolvable:$false] %s1190_s11 }
  0x65   : > { %s1192_s8 = scalar_lea.vmem %s1191_s11, 4096  ;;  %p1193_p4 = scmp.lt.s32.totalorder %s1496_s0, %s1191_s11 }
  0x66   : > { %p1188_p2 = pnand %p1186_p1, %p1142_p3  ;;  %p1194_p8 = scmp.lt.s32.totalorder %s1192_s8, %s1185_s7 }
  0x68   : > { %p1189_p7 = pneg %p1188_p2  ;;  %p1195_p11 = por %p1194_p8, %p1193_p4 }
  0x6a   : > { %p1196_p12 = pnand %p1195_p11, %p1189_p7 }
  0x6c   : > { %1199 = shalt.err (!%p1196_p12)
}
  0x6d   : > { %1040 = dma.hbm_to_vmem [thread:$0]  (!%p1451_p13), %s1492_s15, 2048, %s1496_s0, %s1500_s12, %s1720_s9, %s1720_s9, %s1719_s13  }
  0x6e   : > { %p1722_p3 = scmp.ne.s32.totalorder %s1709_s28, 0 }
  0x6f   : > { %s1532_s20 = sand.u32 (!%p1722_p3), 1, %s1274_s19   ;;  %p1723_p6 = scmp.ne.s32.totalorder (!%p1722_p3), %s1707_s26, 0 }
  0x70   : > { %272 = sbr.rel (%p1722_p3) target bundleno = 1085 (0x43d), region = 40  ;;  %s871_s3 = sshll.u32 (!%p1722_p3), %s1532_s20, 4 }
  0x71   : > { %s275_s25 = scalar_lea.sflag (!%p1722_p3), [#allocation4], %s1532_s20  ;;  %s1538_s16 = scalar_lea.vmem (!%p1722_p3), [#allocation3], %s871_s3 }
  0x77   : > { %1253 = dma.done.wait (%p1723_p6), %s275_s25, 256  }
  0x78   : > { %1255 = vsyncadd (%p1723_p6), %s275_s25, 4294967040  ;;  %s283_s0 = sand.u32 1, %s1363_s24   ;;  %s872_s28 = sshll.u32 %s1532_s20, 7 }
  0x79   : > { %s284_s12 = scalar_lea.sflag [#allocation7], %s283_s0  ;;  %s1546_s13 = scalar_lea.vmem [#allocation6], %s872_s28 }
  0x7a   : > { %1257 = dma.done.wait (%p1723_p6), %s284_s12, 2048  }
  0x7b   : > { %1259 = vsyncadd (%p1723_p6), %s284_s12, 4294965248  ;;  %p1724_p13 = scmp.eq.s32.totalorder %s1363_s24, 0 }
  0x7d   : > { %1261 = dma.done.wait (%p1724_p13), [#allocation7], 2048   ;;  %p1725_p0 = pmov %p1724_p13 }
  0x7e   : > { %v1297_v0 = vmov 0.0   ;;  %vm1298_vm0 = vmmov 0   ;;  %v332_v1 = vld [vmem:[#allocation8] sm:$0xff]  ;;  %v333_v2 = vld [vmem:[#allocation8 + $0x8] sm:$0xff]  ;;  %v334_v3 = vld [vmem:[#allocation8 + $0x10] sm:$0xff]  ;;  %p327_p5 = scmp.lt.s32.totalorder %s1282_s21, 1 }
  0x7f   : > { %1263 = vsyncadd (%p1725_p0), [#allocation7], 4294965248  ;;  %960 = vmatprep.subr.bf16.mxu1 %v1297_v0  ;;  %976 = vmatprep.mubr.msk.bf16.mxu1 %vm1298_vm0, %v1297_v0  ;;  %v348_v4 = vpack.c.bf16 %v333_v2, %v332_v1  ;;  %v335_v5 = vld [vmem:[#allocation8 + $0x18] sm:$0xff]  ;;  %v361_v7 = vld [vmem:[%s1546_s13] sm:$0xff]  ;;  %s325_s14 = scalar_lea.vmem [#allocation9], %s871_s3  ;;  %s883_s7 = sshll.u32 %s1282_s21, 8 }
  0x80   : > { %v349_v6 = vpack.c.bf16 %v335_v5, %v334_v3  ;;  %v362_v8 = vld [vmem:[%s1546_s13 + $0x8] sm:$0xff]  ;;  %v336_v9 = vld [vmem:[#allocation8 + $0x20] sm:$0xff]  ;;  %v338_v13 = vld [vmem:[#allocation8 + $0x30] sm:$0xff]  ;;  %s328_s9 = scalar_select %p327_p5, %s1282_s21, 1 }
  0x81   : > { %928 = vmatprep.subr.bf16.mxu0 %v348_v4  ;;  %961 = vmatpush3.bf16.xpose.msra.mxu1 %v348_v4  ;;  %v337_v10 = vld [vmem:[#allocation8 + $0x28] sm:$0xff]  ;;  %v377_v11 = vpack.c.bf16 %v362_v8, %v361_v7  ;;  %v339_v14 = vld [vmem:[#allocation8 + $0x38] sm:$0xff]  ;;  %v340_v16 = vld [vmem:[#allocation8 + $0x40] sm:$0xff]  ;;  %s731_s29 = sshll.u32 %s325_s14, 4  ;;  %s1640_s8 = scalar_lea.hbm %s1694_s5, %s883_s7  ;;  %s1635_s29 = int_to_ptr.vmem [resolvable:$true] %s731_s29 }
  0x82   : > { %929 = vmatpush3.bf16.xpose.msra.mxu0 %v348_v4  ;;  %962 = vmatprep.subr.bf16.mxu1 %v1297_v0  ;;  %v350_v12 = vpack.c.bf16 %v337_v10, %v336_v9  ;;  %v351_v15 = vpack.c.bf16 %v339_v14, %v338_v13  ;;  %v341_v17 = vld [vmem:[#allocation8 + $0x48] sm:$0xff]  ;;  %v342_v19 = vld [vmem:[#allocation8 + $0x50] sm:$0xff]  ;;  %v343_v20 = vld [vmem:[#allocation8 + $0x58] sm:$0xff]  ;;  %s329_s30 = scalar_lea.vmem %s1691_s2, %s328_s9  ;;  %s716_s21 = scalar_lea.sflag [#allocation5], %s1532_s20 }
  0x83   : > { %930 = vmatprep.subr.bf16.mxu0 %v349_v6  ;;  %944 = vmatprep.mubr.bf16.mxu0 %v377_v11  ;;  %v352_v18 = vpack.c.bf16 %v341_v17, %v340_v16  ;;  %v353_v21 = vpack.c.bf16 %v343_v20, %v342_v19  ;;  %v344_v22 = vld [vmem:[#allocation8 + $0x60] sm:$0xff]  ;;  %v345_v23 = vld [vmem:[#allocation8 + $0x68] sm:$0xff]  ;;  %v346_v25 = vld [vmem:[#allocation8 + $0x70] sm:$0xff]  ;;  %s1200_s3 = scalar_lea.vmem %s1635_s29, 256  ;;  %s1299_s25 = smov [#allocation9]  }
  0x84   : > { %v354_v24 = vpack.c.bf16 %v345_v23, %v344_v22  ;;  %v347_v26 = vld [vmem:[#allocation8 + $0x78] sm:$0xff]  ;;  %v520_v28 = vld [vmem:[%s1538_s16] sm:$0xff]  ;;  %v366_v33 = vld [vmem:[%s1546_s13 + $0x28] sm:$0xff]  ;;  %p1201_p9 = scmp.ne.s32.totalorder %s1635_s29, %s1200_s3 }
  0x85   : > { %v355_v27 = vpack.c.bf16 %v347_v26, %v346_v25  ;;  %v521_v29 = vld [vmem:[%s1538_s16 + $0x8] sm:$0xff]  ;;  %v363_v30 = vld [vmem:[%s1546_s13 + $0x10] sm:$0xff]  ;;  %v365_v32 = vld [vmem:[%s1546_s13 + $0x20] sm:$0xff]  ;;  %s1204_s16 = sshll.u32 %s1299_s25, 4  ;;  %s1205_s16 = int_to_ptr.vmem [resolvable:$false] %s1204_s16 }
  0x86   : > { %v364_v31 = vld [vmem:[%s1546_s13 + $0x18] sm:$0xff]  ;;  %v522_v34 = vpack.c.bf16 %v521_v29, %v520_v28  ;;  %v379_v36 = vpack.c.bf16 %v366_v33, %v365_v32  ;;  %v367_v37 = vld [vmem:[%s1546_s13 + $0x30] sm:$0xff]  ;;  %v369_v39 = vld [vmem:[%s1546_s13 + $0x40] sm:$0xff]  ;;  %p1202_p1 = pnand %p1201_p9, %p1427_p10  ;;  %s1206_s0 = scalar_lea.vmem %s1205_s16, 512 }
  0x87   : > { %v378_v35 = vpack.c.bf16 %v364_v31, %v363_v30  ;;  %v368_v38 = vld [vmem:[%s1546_s13 + $0x38] sm:$0xff]  ;;  %v370_v40 = vld [vmem:[%s1546_s13 + $0x48] sm:$0xff]  ;;  %v371_v43 = vld [vmem:[%s1546_s13 + $0x50] sm:$0xff]  ;;  %p1207_p7 = scmp.lt.s32.totalorder %s1635_s29, %s1205_s16  ;;  %p1208_p4 = scmp.lt.s32.totalorder %s1206_s0, %s1200_s3 }
  0x88   : > { %v380_v41 = vpack.c.bf16 %v368_v38, %v367_v37  ;;  %v381_v42 = vpack.c.bf16 %v370_v40, %v369_v39  ;;  %v372_v44 = vld [vmem:[%s1546_s13 + $0x58] sm:$0xff]  ;;  %v373_v45 = vld [vmem:[%s1546_s13 + $0x60] sm:$0xff]  ;;  %v374_v46 = vld [vmem:[%s1546_s13 + $0x68] sm:$0xff]  ;;  %p1203_p2 = pneg %p1202_p1 }
  0x89   : > { %963 = vmatpush3.bf16.xpose.msra.mxu1 %v349_v6  ;;  %v382_v47 = vpack.c.bf16 %v372_v44, %v371_v43  ;;  %v383_v48 = vpack.c.bf16 %v374_v46, %v373_v45  ;;  %v375_v49 = vld [vmem:[%s1546_s13 + $0x70] sm:$0xff]  ;;  %v376_v50 = vld [vmem:[%s1546_s13 + $0x78] sm:$0xff]  ;;  %v1600_v52 = vld [vmem:[%s1693_s4] ss:$0 sm:$0xff]  ;;  %p1209_p8 = por %p1208_p4, %p1207_p7 }
  0x8a   : > { %931 = vmatpush3.bf16.xpose.msra.mxu0 %v349_v6  ;;  %964 = vmatprep.subr.bf16.mxu1 %v1297_v0  ;;  %v384_v51 = vpack.c.bf16 %v376_v50, %v375_v49 }
  0x8b   : > { %932 = vmatprep.subr.bf16.mxu0 %v350_v12  ;;  %p1210_p11 = pnand %p1209_p8, %p1203_p2 }
  0x91   : > { %965 = vmatpush3.bf16.xpose.msra.mxu1 %v350_v12 }
  0x92   : > { %933 = vmatpush3.bf16.xpose.msra.mxu0 %v350_v12  ;;  %966 = vmatprep.subr.bf16.mxu1 %v1297_v0 }
  0x93   : > { %934 = vmatprep.subr.bf16.mxu0 %v351_v15 }
  0x99   : > { %967 = vmatpush3.bf16.xpose.msra.mxu1 %v351_v15 }
  0x9a   : > { %935 = vmatpush3.bf16.xpose.msra.mxu0 %v351_v15  ;;  %968 = vmatprep.subr.bf16.mxu1 %v1297_v0 }
  0x9b   : > { %936 = vmatprep.subr.bf16.mxu0 %v352_v18 }
  0xa1   : > { %969 = vmatpush3.bf16.xpose.msra.mxu1 %v352_v18 }
  0xa2   : > { %937 = vmatpush3.bf16.xpose.msra.mxu0 %v352_v18  ;;  %970 = vmatprep.subr.bf16.mxu1 %v1297_v0 }
  0xa3   : > { %938 = vmatprep.subr.bf16.mxu0 %v353_v21 }
  0xa9   : > { %971 = vmatpush3.bf16.xpose.msra.mxu1 %v353_v21 }
  0xaa   : > { %939 = vmatpush3.bf16.xpose.msra.mxu0 %v353_v21  ;;  %972 = vmatprep.subr.bf16.mxu1 %v1297_v0 }
  0xab   : > { %940 = vmatprep.subr.bf16.mxu0 %v354_v24 }
  0xb1   : > { %973 = vmatpush3.bf16.xpose.msra.mxu1 %v354_v24 }
  0xb2   : > { %941 = vmatpush3.bf16.xpose.msra.mxu0 %v354_v24  ;;  %974 = vmatprep.subr.bf16.mxu1 %v1297_v0 }
  0xb3   : > { %942 = vmatprep.subr.bf16.mxu0 %v355_v27 }
  0xb9   : > { %975 = vmatpush3.bf16.xpose.msra.mxu1 %v355_v27 }
  0xba   : > { %943 = vmatpush3.bf16.xpose.msra.mxu0 %v355_v27  ;;  %1000 = vmatprep.subr.bf16.mxu1 %v1297_v0 }
  0xbb   : > { %980 = vmatprep.subr.bf16.mxu0 %v1297_v0 }
  0xc0   : > { %977 = vmatmul.mubr.bf16.vlgmr.msra.gmra.mrb[0].mxu1 %v522_v34 }
  0xc1   : > { %945 = vmatmul.mubr.bf16.vlgmr.msra.gmra.mrb[0].mxu0 %v378_v35  ;;  %1001 = vmatpush3.bf16.msra.mxu1 %v377_v11 }
  0xc2   : > { %948 = vmatprep.mubr.bf16.mxu0 %v379_v36  ;;  %1002 = vmatprep.subr.bf16.mxu1 %v1297_v0 }
  0xc3   : > { %1016 = vmatprep.mubr.msk.bf16.mxu1 %vm1298_vm0, %v1297_v0 }
  0xc5   : > { %1003 = vmatpush3.bf16.msra.mxu1 %v378_v35 }
  0xc6   : > { %1004 = vmatprep.subr.bf16.mxu1 %v1297_v0 }
  0xc9   : > { %949 = vmatmul.mubr.bf16.gmra.mrb[4].mxu0 %v380_v41  ;;  %1005 = vmatpush3.bf16.msra.mxu1 %v379_v36 }
  0xca   : > { %952 = vmatprep.mubr.bf16.mxu0 %v381_v42  ;;  %1006 = vmatprep.subr.bf16.mxu1 %v1297_v0 }
  0xcd   : > { %1007 = vmatpush3.bf16.msra.mxu1 %v380_v41 }
  0xce   : > { %1008 = vmatprep.subr.bf16.mxu1 %v1297_v0 }
  0xd1   : > { %953 = vmatmul.mubr.bf16.gmra.mrb[8].mxu0 %v382_v47  ;;  %1009 = vmatpush3.bf16.msra.mxu1 %v381_v42 }
  0xd2   : > { %956 = vmatprep.mubr.bf16.mxu0 %v383_v48  ;;  %1010 = vmatprep.subr.bf16.mxu1 %v1297_v0 }
  0xd5   : > { %1011 = vmatpush3.bf16.msra.mxu1 %v382_v47 }
  0xd6   : > { %1012 = vmatprep.subr.bf16.mxu1 %v1297_v0 }
  0xd9   : > { %957 = vmatmul.mubr.bf16.gmra.mrb[12].mxu0 %v384_v51  ;;  %1013 = vmatpush3.bf16.msra.mxu1 %v383_v48 }
  0xda   : > { %996 = vmatprep.mubr.msk.bf16.mxu0 %vm1298_vm0, %v1297_v0  ;;  %1014 = vmatprep.subr.bf16.mxu1 %v1297_v0 }
  0xdd   : > { %1015 = vmatpush3.bf16.msra.mxu1 %v384_v51 }
 0x193   : > { %v563_v53 = vpop.f32.mrb[0].mxu1 }
 0x194   : > { %v946_v54 = vpop.f32.mrb[0].mxu0  ;;  %v564_v55 = vadd.f32 %v1600_v52, %v563_v53  ;;  %v978_v56 = vpop.f32.mrb[1].mxu1 }
 0x195   : > { %v434_v57 = vadd.f32 %v946_v54, %v1600_v52  ;;  %v425_v58 = vpop.f32.mrb[1].mxu0  ;;  %v566_v59 = vpop.f32.mrb[2].mxu1 }
 0x196   : > { %v426_v60 = vadd.f32 %v1600_v52, %v425_v58  ;;  %v947_v61 = vpop.f32.mrb[2].mxu0  ;;  %v570_v62 = vmax.f32 %v564_v55, 0.0  ;;  %v567_v63 = vadd.f32 %v1600_v52, %v566_v59  ;;  %v979_v1 = vpop.f32.mrb[3].mxu1 }
 0x197   : > { %v437_v2 = vadd.f32 %v947_v61, %v1600_v52  ;;  %v428_v3 = vpop.f32.mrb[3].mxu0  ;;  %v490_v6 = vmax.f32 %v434_v57, 0.0 }
 0x198   : > { %v429_v4 = vadd.f32 %v1600_v52, %v428_v3  ;;  %v571_v5 = vmax.f32 %v567_v63, 0.0  ;;  %v488_v8 = vmax.f32 %v426_v60, 0.0 }
 0x199   : > { %v491_v7 = vmax.f32 %v437_v2, 0.0 }
 0x19a   : > { %v489_v9 = vmax.f32 %v429_v4, 0.0  ;;  %v572_v10 = vpack.c.bf16 %v571_v5, %v570_v62 }
 0x19b   : > { %v505_v11 = vpack.c.bf16 %v491_v7, %v490_v6 }
 0x19c   : > { %v504_v12 = vpack.c.bf16 %v489_v9, %v488_v8  ;;  %v950_v13 = vpop.f32.mrb[4].mxu0 }
 0x19d   : > { %v450_v14 = vadd.f32 %v950_v13, %v1600_v52  ;;  %v441_v15 = vpop.f32.mrb[5].mxu0 }
 0x19e   : > { %981 = vmatpush3.bf16.xpose.msra.mxu0 %v504_v12  ;;  %v442_v16 = vadd.f32 %v1600_v52, %v441_v15  ;;  %v951_v17 = vpop.f32.mrb[6].mxu0 }
 0x19f   : > { %v494_v18 = vmax.f32 %v450_v14, 0.0  ;;  %v453_v19 = vadd.f32 %v951_v17, %v1600_v52  ;;  %v444_v20 = vpop.f32.mrb[7].mxu0  ;;  %982 = vmatprep.subr.bf16.mxu0 %v1297_v0 }
 0x1a0   : > { %v492_v21 = vmax.f32 %v442_v16, 0.0  ;;  %v445_v22 = vadd.f32 %v1600_v52, %v444_v20 }
 0x1a1   : > { %v495_v23 = vmax.f32 %v453_v19, 0.0 }
 0x1a2   : > { %v493_v24 = vmax.f32 %v445_v22, 0.0 }
 0x1a3   : > { %v507_v25 = vpack.c.bf16 %v495_v23, %v494_v18 }
 0x1a4   : > { %v506_v26 = vpack.c.bf16 %v493_v24, %v492_v21  ;;  %v954_v27 = vpop.f32.mrb[8].mxu0 }
 0x1a5   : > { %v466_v28 = vadd.f32 %v954_v27, %v1600_v52  ;;  %v457_v29 = vpop.f32.mrb[9].mxu0 }
 0x1a6   : > { %983 = vmatpush3.bf16.xpose.msra.mxu0 %v505_v11  ;;  %v458_v30 = vadd.f32 %v1600_v52, %v457_v29  ;;  %v955_v31 = vpop.f32.mrb[10].mxu0 }
 0x1a7   : > { %984 = vmatprep.subr.bf16.mxu0 %v1297_v0  ;;  %v498_v32 = vmax.f32 %v466_v28, 0.0  ;;  %v469_v33 = vadd.f32 %v955_v31, %v1600_v52  ;;  %v460_v34 = vpop.f32.mrb[11].mxu0 }
 0x1a8   : > { %v496_v35 = vmax.f32 %v458_v30, 0.0  ;;  %v461_v36 = vadd.f32 %v1600_v52, %v460_v34 }
 0x1a9   : > { %v499_v37 = vmax.f32 %v469_v33, 0.0 }
 0x1aa   : > { %v497_v38 = vmax.f32 %v461_v36, 0.0 }
 0x1ab   : > { %v509_v39 = vpack.c.bf16 %v499_v37, %v498_v32 }
 0x1ac   : > { %v508_v40 = vpack.c.bf16 %v497_v38, %v496_v35  ;;  %v958_v41 = vpop.f32.mrb[12].mxu0 }
 0x1ad   : > { %v482_v42 = vadd.f32 %v958_v41, %v1600_v52  ;;  %v473_v43 = vpop.f32.mrb[13].mxu0 }
 0x1ae   : > { %985 = vmatpush3.bf16.xpose.msra.mxu0 %v506_v26  ;;  %v474_v44 = vadd.f32 %v1600_v52, %v473_v43  ;;  %v959_v45 = vpop.f32.mrb[14].mxu0 }
 0x1af   : > { %986 = vmatprep.subr.bf16.mxu0 %v1297_v0  ;;  %v502_v46 = vmax.f32 %v482_v42, 0.0  ;;  %v485_v47 = vadd.f32 %v959_v45, %v1600_v52  ;;  %v476_v48 = vpop.f32.mrb[15].mxu0 }
 0x1b0   : > { %v500_v49 = vmax.f32 %v474_v44, 0.0  ;;  %v477_v50 = vadd.f32 %v1600_v52, %v476_v48  ;;  %v875_v52 = vld [vmem:[%s329_s30] ss:$0 sm:$0xff] }
 0x1b1   : > { %v503_v51 = vmax.f32 %v485_v47, 0.0 }
 0x1b2   : > { %v501_v53 = vmax.f32 %v477_v50, 0.0 }
 0x1b3   : > { %v511_v54 = vpack.c.bf16 %v503_v51, %v502_v46 }
 0x1b4   : > { %v510_v55 = vpack.c.bf16 %v501_v53, %v500_v49 }
 0x1b6   : > { %987 = vmatpush3.bf16.xpose.msra.mxu0 %v507_v25 }
 0x1b7   : > { %988 = vmatprep.subr.bf16.mxu0 %v1297_v0 }
 0x1be   : > { %989 = vmatpush3.bf16.xpose.msra.mxu0 %v508_v40 }
 0x1bf   : > { %990 = vmatprep.subr.bf16.mxu0 %v1297_v0 }
 0x1c6   : > { %991 = vmatpush3.bf16.xpose.msra.mxu0 %v509_v39 }
 0x1c7   : > { %992 = vmatprep.subr.bf16.mxu0 %v1297_v0 }
 0x1ce   : > { %993 = vmatpush3.bf16.xpose.msra.mxu0 %v510_v55 }
 0x1cf   : > { %994 = vmatprep.subr.bf16.mxu0 %v1297_v0 }
 0x1d6   : > { %995 = vmatpush3.bf16.xpose.msra.mxu0 %v511_v54 }
 0x1dd   : > { %997 = vmatmul.mubr.bf16.vlgmr.msra.gmra.mrb[16].mxu0 %v572_v10 }
 0x2b0   : > { %v622_v56 = vpop.f32.mrb[16].mxu0 }
 0x2b1   : > { %v623_v57 = vadd.f32 %v875_v52, %v622_v56  ;;  %v998_v58 = vpop.f32.mrb[17].mxu0 }
 0x2b2   : > { %v625_v59 = vpop.f32.mrb[18].mxu0 }
 0x2b3   : > { %629 = vmax.xlane.f32.xlu0 %v623_v57  ;;  %v999_v60 = vpop.f32.mrb[19].mxu0  ;;  %v626_v61 = vadd.f32 %v875_v52, %v625_v59 }
 0x2b7   : > { %631 = vmax.xlane.f32.xlu0 %v626_v61 }
 0x340   : > { %v630_v62 = vpop.xlane.xlu0 %629 }
 0x341   : > { %v633_v63 = vsub.f32 %v623_v57, %v630_v62 }
 0x343   : > { %v635_v0 = vmul.f32 1.442695, %v633_v63 }
 0x344   : > { %v632_v1 = vpop.xlane.xlu0 %631 }
 0x345   : > { %1104 = vpow2.f32 %v635_v0  ;;  %v634_v2 = vsub.f32 %v626_v61, %v632_v1 }
 0x347   : > { %v637_v3 = vmul.f32 1.442695, %v634_v2 }
 0x349   : > { %1106 = vpow2.f32 %v637_v3 }
 0x34f   : > { %v1105_v4 = vpop.eup %1104 }
 0x350   : > { %639 = vadd.xlane.f32.xlu1 %v1105_v4 }
 0x353   : > { %v1107_v5 = vpop.eup %1106 }
 0x354   : > { %641 = vadd.xlane.f32.xlu1 %v1107_v5  ;;  %v643_v6 = vpack.c.bf16 %v1107_v5, %v1105_v4 }
 0x356   : > { %1017 = vmatmul.mubr.bf16.vlgmr.msra.gmra.mrb[4].mxu1 %v643_v6 }
 0x3dd   : > { %v640_v7 = vpop.xlane.xlu1 %639 }
 0x3de   : > { %1108 = vrcp.f32 %v640_v7 }
 0x3e1   : > { %v642_v8 = vpop.xlane.xlu1 %641 }
 0x3e2   : > { %1110 = vrcp.f32 %v642_v8 }
 0x3e8   : > { %v1109_v9 = vpop.eup %1108 }
 0x3ec   : > { %v1111_v13 = vpop.eup %1110 }
 0x429   : > { %v702_v10 = vpop.f32.mrb[4].mxu1 }
 0x42a   : > { %v711_v11 = vmul.f32 %v1109_v9, %v702_v10  ;;  %v1018_v12 = vpop.f32.mrb[5].mxu1 }
 0x42b   : > { %v705_v14 = vpop.f32.mrb[6].mxu1 }
 0x42c   : > { %713 = vst [vmem:[%s325_s14] sm:$0xff] %v711_v11  ;;  %v712_v15 = vmul.f32 %v1111_v13, %v705_v14  ;;  %v1019_v16 = vpop.f32.mrb[7].mxu1 }
 0x42e   : > { %714 = vst [vmem:[%s325_s14 + $0x8] sm:$0xff] %v712_v15 }
 0x42f   : > { %1213 = shalt.err (!%p1210_p11)
}
 0x430   : > { %s1214_s28 = scalar_lea.hbm %s1640_s8, 256  ;;  %s1218_s24 = scalar_lea.hbm %s1694_s5, 512 }
 0x431   : > { %p1215_p12 = scmp.ne.s32.totalorder %s1640_s8, %s1214_s28  ;;  %p1219_p13 = scmp.lt.u32.totalorder %s1640_s8, %s1694_s5 }
 0x432   : > { %p1220_p0 = scmp.lt.u32.totalorder %s1218_s24, %s1214_s28  ;;  %p1222_p9 = scmp.lt.u32.totalorder %s1214_s28, %s1640_s8 }
 0x433   : > { %p1216_p3 = pnand %p1215_p12, %p1427_p10 }
 0x434   : > { %p1221_p5 = por %p1220_p0, %p1219_p13 }
 0x435   : > { %p1217_p6 = pneg %p1216_p3 }
 0x436   : > { %p1223_p1 = por %p1222_p9, %p1221_p5 }
 0x438   : > { %p1224_p2 = pnand %p1223_p1, %p1217_p6 }
 0x43a   : > { %1227 = shalt.err (!%p1224_p2)
}
 0x43b   : > { %s1300_s15 = smov 128   ;;  %s1301_s10 = smov 8  }
 0x43c   : > { %1028 = dma.vmem_to_hbm [thread:$0]  (%p1427_p10), %s1635_s29, 256, %s1640_s8, %s716_s21, %s1300_s15, %s1300_s15, %s1301_s10  }
 0x43d PF: > { %s746_s30 = sand.u32 1, %s1270_s18   ;;  %p1726_p7 = scmp.ne.s32.totalorder %s1708_s27, 0 }
 0x43e   : > { %p1727_p4 = scmp.ge.s32.totalorder %s1290_s23, 2  ;;  %s747_s14 = scalar_lea.sflag [#allocation5], %s746_s30 }
 0x440   : > { %p1042_p8 = pnand %p1727_p4, %p1726_p7 }
 0x442   : > { %1265 = dma.done.wait (!%p1042_p8), %s747_s14, 256  }
 0x443   : > { %1267 = vsyncadd (!%p1042_p8), %s747_s14, 4294967040  ;;  %s24_s23 = sadd.s32 1, %s1290_s23   ;;  %s1728_s7 = sld [smem:[#allocation14_spill]] }
 0x444   : > { %p21_p11 = scmp.ge.s32.totalorder %s24_s23, 4   ;;  %s1729_s20 = sld [smem:[#allocation16_spill]] }
 0x445   : > { %s1730_s6 = sld [smem:[#allocation15_spill]]  ;;  %s1731_s18 = smov %s1274_s19 }
 0x446   : > { %s1733_s21 = smov %s1286_s22  ;;  %23 = sbr.rel (!%p21_p11) target bundleno = 11 (0xb), region = 109 }
 0x449   : > { %s1732_s19 = smov %s1728_s7 }
 0x44b   : > { %s1734_s22 = smov %s1730_s6 }
 0x44d   :  { %752 = vsyncpa [#allocation4], 1 }
 0x44e   :  { %754 = vsyncpa [#allocation4 + $0x1], 1 }
 0x44f   :  { %755 = vsyncpa [#allocation7], 1 }
 0x450   :  { %757 = vsyncpa [#allocation7 + $0x1], 1 }
 0x451   :  { %758 = vsyncpa [#allocation5], 1 }
 0x452   :  { %760 = vsyncpa [#allocation5 + $0x1], 1 }

</bundles_post_ra>
